<compile_context>
chip_gen: v6e
topology: v6e:2x2x1
jax: 0.10.0
libtpu: 0.0.40
codegen_flags: <defaults>
</compile_context>

<pallas_src>
import math

import jax
import jax.numpy as jnp
from jax import lax
from jax.experimental import pallas as pl
from jax.experimental.pallas import tpu as pltpu

# ---------------- hyperparameters (module __init__ kwargs) ----------------
OBS_DIM = 8
ACT_DIM = 4
IN_DIM = OBS_DIM + ACT_DIM
HIDDEN = 32                       # hidden_sizes = (32, 32)
MIN_LOG_STD = -20.0
MAX_LOG_STD = 2.0
DENOMINATOR = max(abs(MIN_LOG_STD), MAX_LOG_STD)
INV_DENOMINATOR = 1.0 / DENOMINATOR
# hidden_activation='relu', output_activation='linear' (identity)


def _round_up(x, m):
    return (x + m - 1) // m * m


def _init_mlp_params(key, sizes):
    """Mirror of init_weights(): uniform(+-sqrt(6/(fan_in+fan_out))) weights, zero bias.
    Weights returned as (in, out)."""
    ws, bs = [], []
    for j in range(len(sizes) - 1):
        fan_in, fan_out = sizes[j], sizes[j + 1]
        key, sub = jax.random.split(key)
        bound = math.sqrt(6.0 / (fan_in + fan_out))
        w = jax.random.uniform(sub, (fan_in, fan_out), jnp.float32, -bound, bound)
        b = jnp.zeros((1, fan_out), jnp.float32)
        ws.append(w)
        bs.append(b)
    return ws, bs, key


def fuse_params(mean_ws, mean_bs, std_ws, std_bs):
    """Pack the two (in,out)-layout MLPs into one transposed, block-diagonal MLP."""
    H = HIDDEN
    # layer 0: (2H, in), split into obs / act columns (no wrapper-side input concat)
    w0 = jnp.concatenate([mean_ws[0].T, std_ws[0].T], axis=0)          # (2H, IN_DIM)
    w0_obs = w0[:, :OBS_DIM]                                           # (2H, OBS_DIM)
    w0_act = w0[:, OBS_DIM:]                                           # (2H, ACT_DIM)
    b0 = jnp.concatenate([mean_bs[0], std_bs[0]], axis=1).T            # (2H, 1)
    # layer 1: block-diagonal (2H, 2H)
    w1 = jnp.zeros((2 * H, 2 * H), jnp.float32)
    w1 = w1.at[:H, :H].set(mean_ws[1].T)
    w1 = w1.at[H:, H:].set(std_ws[1].T)
    b1 = jnp.concatenate([mean_bs[1], std_bs[1]], axis=1).T            # (2H, 1)
    # layer 2: (2, 2H); row 0 -> mean head, row 1 -> log_std head
    w2 = jnp.zeros((2, 2 * H), jnp.float32)
    w2 = w2.at[0:1, :H].set(mean_ws[2].T)
    w2 = w2.at[1:2, H:].set(std_ws[2].T)
    b2 = jnp.concatenate([mean_bs[2], std_bs[2]], axis=1).T            # (2, 1)
    return (w0_obs, w0_act, b0, w1, b1, w2, b2)


# ---------------- Pallas kernel (batch on lanes for compute/output) ----------------
_NT = (((1,), (1,)), ((), ()))    # contract the last dim of both operands (A @ B^T)


def _kernel(obs_ref, act_ref, w0o_ref, w0a_ref, b0_ref, w1_ref, b1_ref,
            w2_ref, b2_ref, o_ref):
    # obs_ref: (TB, OBS_DIM), act_ref: (TB, ACT_DIM) -- batch-major HBM layout.
    # Layer 0: contract feature dims directly; the feature/batch swizzle happens in
    # VMEM (XLU) inside dot_general, not as wrapper-side XLA transposes.
    h = lax.dot_general(w0o_ref[...], obs_ref[...], _NT,
                        preferred_element_type=jnp.float32)
    h = h + lax.dot_general(w0a_ref[...], act_ref[...], _NT,
                            preferred_element_type=jnp.float32)
    h = jnp.maximum(h + b0_ref[...], 0.0)                              # (2H, TB)
    # layer 1 (block-diagonal), relu
    h = jnp.maximum(
        jnp.dot(w1_ref[...], h, preferred_element_type=jnp.float32) + b1_ref[...], 0.0)
    # layer 2 (block-diagonal): row 0 = value_mean, row 1 = log_std
    y = jnp.dot(w2_ref[...], h, preferred_element_type=jnp.float32) + b2_ref[...]
    # log_std transform on row 1; row 0 keeps the raw mean.  tanh -> EUP slot.
    t = jnp.tanh(y * INV_DENOMINATOR)
    vls = jnp.maximum(MAX_LOG_STD * t, 0.0) + jnp.minimum(-MIN_LOG_STD * t, 0.0)
    row = lax.broadcasted_iota(jnp.int32, y.shape, 0)
    o_ref[...] = jnp.where(row == 0, y, vls)                           # lane-dense (2, TB)


def action_value_distri(obs, act, fused_params, *, block_b=4096):
    """obs: (B, OBS_DIM), act: (B, ACT_DIM), fused_params from fuse_params()."""
    w0o, w0a, b0, w1, b1, w2, b2 = fused_params
    B = obs.shape[0]
    # Large lane tile to amortize the ~0.35 us per-grid-step overhead, but capped at
    # ceil(B/2) (rounded to 128) so the grid keeps >= 2 steps and both of v7x's
    # TensorCores get work on the "parallel" batch axis.
    tb = max(128, min(block_b, _round_up(pl.cdiv(B, 2), 128)))
    grid = (pl.cdiv(B, tb),)   # boundary blocks handled by Pallas (no explicit pad)

    obs32 = obs.astype(jnp.float32)
    act32 = act.astype(jnp.float32)

    def const(shape):
        # Constant block index -> Pallas keeps the tile VMEM-resident across steps.
        return pl.BlockSpec(shape, lambda i: (0, 0))

    n_param = sum(int(p.size) for p in fused_params)
    cost = pl.CostEstimate(
        flops=2 * B * (IN_DIM * 2 * HIDDEN + (2 * HIDDEN) ** 2 + 2 * HIDDEN * 2),
        transcendentals=2 * B,
        bytes_accessed=4 * (B * (IN_DIM + 2) + n_param),
    )

    out_t = pl.pallas_call(
        _kernel,
        out_shape=jax.ShapeDtypeStruct((2, B), jnp.float32),
        grid=grid,
        in_specs=[
            pl.BlockSpec((tb, OBS_DIM), lambda i: (i, 0)),
            pl.BlockSpec((tb, ACT_DIM), lambda i: (i, 0)),
            const(w0o.shape), const(w0a.shape), const(b0.shape),
            const(w1.shape), const(b1.shape),
            const(w2.shape), const(b2.shape),
        ],
        out_specs=pl.BlockSpec((2, tb), lambda i: (0, i)),
        compiler_params=pltpu.CompilerParams(
            dimension_semantics=("parallel",),
            # ~13 MiB actual footprint at tb=4096 (lane-padded obs/act double buffers
            # dominate); 32 MiB gives headroom and fits v5e/v6e/v7x scoped limits.
            vmem_limit_bytes=32 * 1024 * 1024,
        ),
        cost_estimate=cost,
    )(obs32, act32, w0o, w0a, b0, w1, b1, w2, b2)

    return out_t.T                                                     # (B, 2)


# ---------------- pure-JAX reference ----------------
def _reference(obs, act, params):
    x = jnp.concatenate([obs, act], axis=-1).astype(jnp.float32)
    mean_ws, mean_bs, std_ws, std_bs = params

    def run(ws, bs, x):
        h = x
        for i, (w, b) in enumerate(zip(ws, bs)):
            h = jnp.dot(h, w, precision=jax.lax.Precision.HIGHEST) + b
            if i < len(ws) - 1:
                h = jnp.maximum(h, 0.0)
        return h

    value_mean = run(mean_ws, mean_bs, x)
    log_std = run(std_ws, std_bs, x)
    t = jnp.tanh(log_std / DENOMINATOR)
    vls = jnp.maximum(MAX_LOG_STD * t, 0.0) + jnp.minimum(-MIN_LOG_STD * t, 0.0)
    return jnp.concatenate([value_mean, vls], axis=-1)


if __name__ == "__main__":
    key = jax.random.PRNGKey(0)

    sizes = [IN_DIM, HIDDEN, HIDDEN, 1]
    mean_ws, mean_bs, key = _init_mlp_params(key, sizes)
    std_ws, std_bs, key = _init_mlp_params(key, sizes)
    params = (mean_ws, mean_bs, std_ws, std_bs)
    fused = fuse_params(mean_ws, mean_bs, std_ws, std_bs)

    # Small-shape check (module-consistent): batch=2.
    B = 2
    key, k1, k2 = jax.random.split(key, 3)
    obs = jax.random.normal(k1, (B, OBS_DIM), jnp.float32)
    act = jax.random.normal(k2, (B, ACT_DIM), jnp.float32)

    out = jax.block_until_ready(action_value_distri(obs, act, fused))
    ref = _reference(obs, act, params)
    assert out.shape == (B, 2), out.shape
    assert jnp.allclose(out, ref, atol=1e-5, rtol=1e-5), (out, ref)

    # Second check exercising a multi-step grid and a partial boundary block.
    B2 = 300
    key, k3, k4 = jax.random.split(key, 3)
    obs2 = jax.random.normal(k3, (B2, OBS_DIM), jnp.float32)
    act2 = jax.random.normal(k4, (B2, ACT_DIM), jnp.float32)
    out2 = jax.block_until_ready(action_value_distri(obs2, act2, fused))
    ref2 = _reference(obs2, act2, params)
    assert out2.shape == (B2, 2), out2.shape
    assert jnp.allclose(out2, ref2, atol=1e-4, rtol=1e-5), float(jnp.max(jnp.abs(out2 - ref2)))

    print("KERNEL_OK")
</pallas_src>

<mosaic_0001>
module attributes {stable_mosaic.version = 11 : i64} {
  func.func @_kernel(%arg0: i32, %arg1: memref<128x8xf32, #tpu.memory_space<vmem>>, %arg2: memref<128x4xf32, #tpu.memory_space<vmem>>, %arg3: memref<64x8xf32, #tpu.memory_space<vmem>>, %arg4: memref<64x4xf32, #tpu.memory_space<vmem>>, %arg5: memref<64x1xf32, #tpu.memory_space<vmem>>, %arg6: memref<64x64xf32, #tpu.memory_space<vmem>>, %arg7: memref<64x1xf32, #tpu.memory_space<vmem>>, %arg8: memref<2x64xf32, #tpu.memory_space<vmem>>, %arg9: memref<2x1xf32, #tpu.memory_space<vmem>>, %arg10: memref<2x128xf32, #tpu.memory_space<vmem>>) attributes {dimension_semantics = [#tpu.dimension_semantics<parallel>], iteration_bounds = array<i64: 1>, scalar_prefetch = 0 : i64, scratch_operands = 0 : i64, tpu.core_type = #tpu.core_type<tc>, window_params = [{transform_indices = @transform_0, window_bounds = array<i64: 128, 8>}, {transform_indices = @transform_1, window_bounds = array<i64: 128, 4>}, {pipeline_mode = #tpu.pipeline_mode<synchronous>, transform_indices = @transform_2, window_bounds = array<i64: 64, 8>}, {pipeline_mode = #tpu.pipeline_mode<synchronous>, transform_indices = @transform_3, window_bounds = array<i64: 64, 4>}, {pipeline_mode = #tpu.pipeline_mode<synchronous>, transform_indices = @transform_4, window_bounds = array<i64: 64, 1>}, {pipeline_mode = #tpu.pipeline_mode<synchronous>, transform_indices = @transform_5, window_bounds = array<i64: 64, 64>}, {pipeline_mode = #tpu.pipeline_mode<synchronous>, transform_indices = @transform_6, window_bounds = array<i64: 64, 1>}, {pipeline_mode = #tpu.pipeline_mode<synchronous>, transform_indices = @transform_7, window_bounds = array<i64: 2, 64>}, {pipeline_mode = #tpu.pipeline_mode<synchronous>, transform_indices = @transform_8, window_bounds = array<i64: 2, 1>}, {transform_indices = @transform_9, window_bounds = array<i64: 2, 128>}]} {
    %c0 = arith.constant 0 : index
    %c0_0 = arith.constant 0 : index
    %0 = vector.load %arg3[%c0, %c0_0] : memref<64x8xf32, #tpu.memory_space<vmem>>, vector<64x8xf32>
    %c0_1 = arith.constant 0 : index
    %c0_2 = arith.constant 0 : index
    %1 = vector.load %arg1[%c0_1, %c0_2] : memref<128x8xf32, #tpu.memory_space<vmem>>, vector<128x8xf32>
    %cst = arith.constant dense<0.000000e+00> : vector<64x128xf32>
    %2 = tpu.matmul %0, %1, %cst {dimension_numbers = #tpu.dot_dimension_numbers<[1], [1], [0], [0], [0, 0, 1, 0], [], []>} : vector<64x8xf32>, vector<128x8xf32>, vector<64x128xf32> -> vector<64x128xf32>
    %c0_3 = arith.constant 0 : index
    %c0_4 = arith.constant 0 : index
    %3 = vector.load %arg4[%c0_3, %c0_4] : memref<64x4xf32, #tpu.memory_space<vmem>>, vector<64x4xf32>
    %c0_5 = arith.constant 0 : index
    %c0_6 = arith.constant 0 : index
    %4 = vector.load %arg2[%c0_5, %c0_6] : memref<128x4xf32, #tpu.memory_space<vmem>>, vector<128x4xf32>
    %cst_7 = arith.constant dense<0.000000e+00> : vector<64x128xf32>
    %5 = tpu.matmul %3, %4, %cst_7 {dimension_numbers = #tpu.dot_dimension_numbers<[1], [1], [0], [0], [0, 0, 1, 0], [], []>} : vector<64x4xf32>, vector<128x4xf32>, vector<64x128xf32> -> vector<64x128xf32>
    %6 = arith.addf %2, %5 : vector<64x128xf32>
    %c0_8 = arith.constant 0 : index
    %c0_9 = arith.constant 0 : index
    %7 = vector.load %arg5[%c0_8, %c0_9] : memref<64x1xf32, #tpu.memory_space<vmem>>, vector<64x1xf32>
    %8 = vector.broadcast %7 : vector<64x1xf32> to vector<64x128xf32>
    %9 = arith.addf %6, %8 : vector<64x128xf32>
    %cst_10 = arith.constant 0.000000e+00 : f32
    %10 = vector.broadcast %cst_10 : f32 to vector<64x128xf32>
    %11 = arith.maximumf %9, %10 : vector<64x128xf32>
    %c0_11 = arith.constant 0 : index
    %c0_12 = arith.constant 0 : index
    %12 = vector.load %arg6[%c0_11, %c0_12] : memref<64x64xf32, #tpu.memory_space<vmem>>, vector<64x64xf32>
    %cst_13 = arith.constant dense<0.000000e+00> : vector<64x128xf32>
    %13 = tpu.matmul %12, %11, %cst_13 {dimension_numbers = #tpu.dot_dimension_numbers<[1], [0], [0], [1], [0, 0, 1, 1], [], []>} : vector<64x64xf32>, vector<64x128xf32>, vector<64x128xf32> -> vector<64x128xf32>
    %c0_14 = arith.constant 0 : index
    %c0_15 = arith.constant 0 : index
    %14 = vector.load %arg7[%c0_14, %c0_15] : memref<64x1xf32, #tpu.memory_space<vmem>>, vector<64x1xf32>
    %15 = vector.broadcast %14 : vector<64x1xf32> to vector<64x128xf32>
    %16 = arith.addf %13, %15 : vector<64x128xf32>
    %cst_16 = arith.constant 0.000000e+00 : f32
    %17 = vector.broadcast %cst_16 : f32 to vector<64x128xf32>
    %18 = arith.maximumf %16, %17 : vector<64x128xf32>
    %c0_17 = arith.constant 0 : index
    %c0_18 = arith.constant 0 : index
    %19 = vector.load %arg8[%c0_17, %c0_18] : memref<2x64xf32, #tpu.memory_space<vmem>>, vector<2x64xf32>
    %cst_19 = arith.constant dense<0.000000e+00> : vector<2x128xf32>
    %20 = tpu.matmul %19, %18, %cst_19 {dimension_numbers = #tpu.dot_dimension_numbers<[1], [0], [0], [1], [0, 0, 1, 1], [], []>} : vector<2x64xf32>, vector<64x128xf32>, vector<2x128xf32> -> vector<2x128xf32>
    %c0_20 = arith.constant 0 : index
    %c0_21 = arith.constant 0 : index
    %21 = vector.load %arg9[%c0_20, %c0_21] : memref<2x1xf32, #tpu.memory_space<vmem>>, vector<2x1xf32>
    %22 = vector.broadcast %21 : vector<2x1xf32> to vector<2x128xf32>
    %23 = arith.addf %20, %22 : vector<2x128xf32>
    %cst_22 = arith.constant 5.000000e-02 : f32
    %24 = vector.broadcast %cst_22 : f32 to vector<2x128xf32>
    %25 = arith.mulf %23, %24 : vector<2x128xf32>
    %26 = math.tanh %25 : vector<2x128xf32>
    %cst_23 = arith.constant 2.000000e+00 : f32
    %27 = vector.broadcast %cst_23 : f32 to vector<2x128xf32>
    %28 = arith.mulf %27, %26 : vector<2x128xf32>
    %cst_24 = arith.constant 0.000000e+00 : f32
    %29 = vector.broadcast %cst_24 : f32 to vector<2x128xf32>
    %30 = arith.maximumf %28, %29 : vector<2x128xf32>
    %cst_25 = arith.constant 2.000000e+01 : f32
    %31 = vector.broadcast %cst_25 : f32 to vector<2x128xf32>
    %32 = arith.mulf %31, %26 : vector<2x128xf32>
    %cst_26 = arith.constant 0.000000e+00 : f32
    %33 = vector.broadcast %cst_26 : f32 to vector<2x128xf32>
    %34 = arith.minimumf %32, %33 : vector<2x128xf32>
    %35 = arith.addf %30, %34 : vector<2x128xf32>
    %36 = tpu.iota {dimensions = array<i32: 0>} : vector<2x128xi32>
    %c0_i32 = arith.constant 0 : i32
    %37 = vector.broadcast %c0_i32 : i32 to vector<2x128xi32>
    %38 = arith.cmpi eq, %36, %37 : vector<2x128xi32>
    %39 = arith.select %38, %23, %35 : vector<2x128xi1>, vector<2x128xf32>
    %c0_27 = arith.constant 0 : index
    %c0_28 = arith.constant 0 : index
    %40 = vector.load %arg10[%c0_27, %c0_28] : memref<2x128xf32, #tpu.memory_space<vmem>>, vector<2x128xf32>
    tpu.vector_store %arg10[%c0_27, %c0_28], %39 {strides = array<i32>} : memref<2x128xf32, #tpu.memory_space<vmem>>, vector<2x128xf32>,
    return
  }
  func.func @transform_0(%arg0: i32) -> (i32, i32) {
    %c0_i32 = arith.constant 0 : i32
    %c0_i32_0 = arith.constant 0 : i32
    return %arg0, %c0_i32 : i32, i32
  }
  func.func @transform_1(%arg0: i32) -> (i32, i32) {
    %c0_i32 = arith.constant 0 : i32
    %c0_i32_0 = arith.constant 0 : i32
    return %arg0, %c0_i32 : i32, i32
  }
  func.func @transform_2(%arg0: i32) -> (i32, i32) {
    %c0_i32 = arith.constant 0 : i32
    %c0_i32_0 = arith.constant 0 : i32
    %c0_i32_1 = arith.constant 0 : i32
    return %c0_i32, %c0_i32_0 : i32, i32
  }
  func.func @transform_3(%arg0: i32) -> (i32, i32) {
    %c0_i32 = arith.constant 0 : i32
    %c0_i32_0 = arith.constant 0 : i32
    %c0_i32_1 = arith.constant 0 : i32
    return %c0_i32, %c0_i32_0 : i32, i32
  }
  func.func @transform_4(%arg0: i32) -> (i32, i32) {
    %c0_i32 = arith.constant 0 : i32
    %c0_i32_0 = arith.constant 0 : i32
    %c0_i32_1 = arith.constant 0 : i32
    return %c0_i32, %c0_i32_0 : i32, i32
  }
  func.func @transform_5(%arg0: i32) -> (i32, i32) {
    %c0_i32 = arith.constant 0 : i32
    %c0_i32_0 = arith.constant 0 : i32
    %c0_i32_1 = arith.constant 0 : i32
    return %c0_i32, %c0_i32_0 : i32, i32
  }
  func.func @transform_6(%arg0: i32) -> (i32, i32) {
    %c0_i32 = arith.constant 0 : i32
    %c0_i32_0 = arith.constant 0 : i32
    %c0_i32_1 = arith.constant 0 : i32
    return %c0_i32, %c0_i32_0 : i32, i32
  }
  func.func @transform_7(%arg0: i32) -> (i32, i32) {
    %c0_i32 = arith.constant 0 : i32
    %c0_i32_0 = arith.constant 0 : i32
    %c0_i32_1 = arith.constant 0 : i32
    return %c0_i32, %c0_i32_0 : i32, i32
  }
  func.func @transform_8(%arg0: i32) -> (i32, i32) {
    %c0_i32 = arith.constant 0 : i32
    %c0_i32_0 = arith.constant 0 : i32
    %c0_i32_1 = arith.constant 0 : i32
    return %c0_i32, %c0_i32_0 : i32, i32
  }
  func.func @transform_9(%arg0: i32) -> (i32, i32) {
    %c0_i32 = arith.constant 0 : i32
    %c0_i32_0 = arith.constant 0 : i32
    return %c0_i32, %arg0 : i32, i32
  }
}

</mosaic_0001>

<bundles_post_ra>
// kernel: tpu_custom_call.1
= control target key start
LH: loop header
LB: loop body
LE: loop exit
PB: predicated region body
PF: predicated region fallthrough
CT: control target
= control target key end

     0   :  { %vm81_vm0 = vcmask 31744   ;;  %vm259_vm1 = vcmask 64512   ;;  %v1096_v6 = vmov 0   ;;  %s1464_s0 = inlined_call_operand.vmem [shape: f32[2,8], index: 0, kind: input, shape index: {}]   ;;  %s1465_s1 = inlined_call_operand.vmem [shape: f32[2,4], index: 1, kind: input, shape index: {}]   ;;  %s1466_s2 = inlined_call_operand.vmem [shape: f32[64,8], index: 2, kind: input, shape index: {}]   ;;  %s1467_s3 = inlined_call_operand.vmem [shape: f32[64,4], index: 3, kind: input, shape index: {}]   ;;  %s1468_s4 = inlined_call_operand.vmem [shape: f32[64,1], index: 4, kind: input, shape index: {}]   ;;  %s1469_s5 = inlined_call_operand.vmem [shape: f32[64,64], index: 5, kind: input, shape index: {}]   ;;  %s1470_s6 = inlined_call_operand.vmem [shape: f32[64,1], index: 6, kind: input, shape index: {}]   ;;  %s1471_s7 = inlined_call_operand.vmem [shape: f32[2,64], index: 7, kind: input, shape index: {}]   ;;  %s1472_s8 = inlined_call_operand.vmem [shape: f32[2,1], index: 8, kind: input, shape index: {}]   ;;  %s1473_s9 = inlined_call_operand.hbm [shape: f32[2,2], index: 9, kind: output, shape index: {}]  }
   0x1   :  { %v80_v0 = vld [vmem:[%s1465_s1 + $0x78] sm:$0xff]  ;;  %v79_v2 = vld [vmem:[%s1465_s1 + $0x70] sm:$0xff]  ;;  %v78_v4 = vld [vmem:[%s1465_s1 + $0x68] sm:$0xff]  ;;  %1070 = vset.pattern.permute.xlu0 %v1096_v6  ;;  %1071 = vset.pattern.permute.xlu1 %v1096_v6 }
   0x2   :  { %v56_v1 = vld [vmem:[%s1464_s0 + $0x78] sm:$0xff]  ;;  %931 = vmatprep.subr.msk.mxu0 %vm81_vm0, %v80_v0  ;;  %v55_v3 = vld [vmem:[%s1464_s0 + $0x70] sm:$0xff]  ;;  %v54_v5 = vld [vmem:[%s1464_s0 + $0x68] sm:$0xff] }
   0x3   :  { %975 = vmatprep.subr.msk.mxu1 %vm259_vm1, %v56_v1  ;;  %932 = vmatpush3.xpose.msk.msra.mxu0 %vm81_vm0, %v80_v0  ;;  %v77_v7 = vld [vmem:[%s1465_s1 + $0x60] sm:$0xff]  ;;  %v76_v11 = vld [vmem:[%s1465_s1 + $0x58] sm:$0xff]  ;;  %v75_v13 = vld [vmem:[%s1465_s1 + $0x50] sm:$0xff] }
   0x4   :  { %976 = vmatpush3.xpose.msk.msra.mxu1 %vm259_vm1, %v56_v1  ;;  %933 = vmatprep.subr.msk.mxu0 %vm81_vm0, %v79_v2  ;;  %v53_v8 = vld [vmem:[%s1464_s0 + $0x60] sm:$0xff]  ;;  %v52_v12 = vld [vmem:[%s1464_s0 + $0x58] sm:$0xff]  ;;  %v51_v14 = vld [vmem:[%s1464_s0 + $0x50] sm:$0xff] }
   0x5   :  { %977 = vmatprep.subr.msk.mxu1 %vm259_vm1, %v55_v3  ;;  %v57_v9 = vld [vmem:[%s1467_s3] sm:$0xff]  ;;  %v444_v15 = vld [vmem:[%s1468_s4 + $0x38] sm:$0xff]  ;;  %v442_v16 = vld [vmem:[%s1468_s4 + $0x28] sm:$0xff] }
   0x6   :  { %v33_v10 = vld [vmem:[%s1466_s2] sm:$0xff]  ;;  %963 = vmatprep.mubr.msk.f32.mxu0 %vm81_vm0, %v57_v9  ;;  %482 = vperm.xlu0 %1070, %v444_v15   ;;  %v443_v17 = vld [vmem:[%s1468_s4 + $0x30] sm:$0xff]  ;;  %v74_v19 = vld [vmem:[%s1465_s1 + $0x48] sm:$0xff] }
   0x7   :  { %934 = vmatpush3.xpose.msk.msra.mxu0 %vm81_vm0, %v79_v2  ;;  %1007 = vmatprep.mubr.msk.f32.mxu1 %vm259_vm1, %v33_v10  ;;  %v441_v18 = vld [vmem:[%s1468_s4 + $0x20] sm:$0xff]  ;;  %v50_v20 = vld [vmem:[%s1464_s0 + $0x48] sm:$0xff] }
   0x8   :  { %978 = vmatpush3.xpose.msk.msra.mxu1 %vm259_vm1, %v55_v3  ;;  %935 = vmatprep.subr.msk.mxu0 %vm81_vm0, %v78_v4 }
   0x9   :  { %979 = vmatprep.subr.msk.mxu1 %vm259_vm1, %v54_v5  ;;  %472 = vperm.xlu1 %1071, %v442_v16  }
   0xa   :  { %477 = vperm.xlu0 %1070, %v443_v17  }
   0xb   :  { %936 = vmatpush3.xpose.msk.msra.mxu0 %vm81_vm0, %v78_v4 }
   0xc   :  { %980 = vmatpush3.xpose.msk.msra.mxu1 %vm259_vm1, %v54_v5  ;;  %937 = vmatprep.subr.msk.mxu0 %vm81_vm0, %v77_v7 }
   0xd   :  { %981 = vmatprep.subr.msk.mxu1 %vm259_vm1, %v53_v8  ;;  %467 = vperm.xlu1 %1071, %v441_v18  }
   0xf   :  { %938 = vmatpush3.xpose.msk.msra.mxu0 %vm81_vm0, %v77_v7 }
  0x10   :  { %982 = vmatpush3.xpose.msk.msra.mxu1 %vm259_vm1, %v53_v8  ;;  %939 = vmatprep.subr.msk.mxu0 %vm81_vm0, %v76_v11 }
  0x11   :  { %983 = vmatprep.subr.msk.mxu1 %vm259_vm1, %v52_v12 }
  0x13   :  { %940 = vmatpush3.xpose.msk.msra.mxu0 %vm81_vm0, %v76_v11 }
  0x14   :  { %984 = vmatpush3.xpose.msk.msra.mxu1 %vm259_vm1, %v52_v12  ;;  %941 = vmatprep.subr.msk.mxu0 %vm81_vm0, %v75_v13 }
  0x15   :  { %985 = vmatprep.subr.msk.mxu1 %vm259_vm1, %v51_v14 }
  0x16   :  { %14 = vsyncpa [#allocation3], 0  ;;  %v440_v21 = vld [vmem:[%s1468_s4 + $0x18] sm:$0xff]  ;;  %v439_v22 = vld [vmem:[%s1468_s4 + $0x10] sm:$0xff]  ;;  %vm557_vm2 = vcmask 523264   ;;  %vm1098_vm3 = vmmov 0  }
  0x17   :  { %942 = vmatpush3.xpose.msk.msra.mxu0 %vm81_vm0, %v75_v13  ;;  %v73_v23 = vld [vmem:[%s1465_s1 + $0x40] sm:$0xff]  ;;  %462 = vperm.xlu0 %1070, %v440_v21   ;;  %v438_v25 = vld [vmem:[%s1468_s4 + $0x8] sm:$0xff]  ;;  %v72_v27 = vld [vmem:[%s1465_s1 + $0x38] sm:$0xff]  ;;  %s1099_s15 = smov [#allocation2]  }
  0x18   :  { %986 = vmatpush3.xpose.msk.msra.mxu1 %vm259_vm1, %v51_v14  ;;  %943 = vmatprep.subr.msk.mxu0 %vm81_vm0, %v74_v19  ;;  %v49_v24 = vld [vmem:[%s1464_s0 + $0x40] sm:$0xff]  ;;  %v48_v28 = vld [vmem:[%s1464_s0 + $0x38] sm:$0xff]  ;;  %v515_v30 = vld [vmem:[%s1470_s6 + $0x30] sm:$0xff] }
  0x19   :  { %987 = vmatprep.subr.msk.mxu1 %vm259_vm1, %v50_v20  ;;  %457 = vperm.xlu1 %1071, %v439_v22   ;;  %v437_v26 = vld [vmem:[%s1468_s4] sm:$0xff]  ;;  %v516_v29 = vld [vmem:[%s1470_s6 + $0x38] sm:$0xff]  ;;  %v71_v31 = vld [vmem:[%s1465_s1 + $0x30] sm:$0xff] }
  0x1a   :  { %v47_v32 = vld [vmem:[%s1464_s0 + $0x30] sm:$0xff]  ;;  %v514_v33 = vld [vmem:[%s1470_s6 + $0x28] sm:$0xff]  ;;  %v513_v34 = vld [vmem:[%s1470_s6 + $0x20] sm:$0xff] }
  0x1b   :  { %944 = vmatpush3.xpose.msk.msra.mxu0 %vm81_vm0, %v74_v19  ;;  %452 = vperm.xlu0 %1070, %v438_v25   ;;  %v70_v35 = vld [vmem:[%s1465_s1 + $0x28] sm:$0xff]  ;;  %v512_v37 = vld [vmem:[%s1470_s6 + $0x18] sm:$0xff]  ;;  %v511_v38 = vld [vmem:[%s1470_s6 + $0x10] sm:$0xff] }
  0x1c   :  { %988 = vmatpush3.xpose.msk.msra.mxu1 %vm259_vm1, %v50_v20  ;;  %945 = vmatprep.subr.msk.mxu0 %vm81_vm0, %v73_v23  ;;  %v46_v36 = vld [vmem:[%s1464_s0 + $0x28] sm:$0xff]  ;;  %v69_v39 = vld [vmem:[%s1465_s1 + $0x20] sm:$0xff]  ;;  %v68_v43 = vld [vmem:[%s1465_s1 + $0x18] sm:$0xff] }
  0x1d   :  { %989 = vmatprep.subr.msk.mxu1 %vm259_vm1, %v49_v24  ;;  %447 = vperm.xlu1 %1071, %v437_v26   ;;  %v45_v40 = vld [vmem:[%s1464_s0 + $0x20] sm:$0xff]  ;;  %v510_v41 = vld [vmem:[%s1470_s6 + $0x8] sm:$0xff]  ;;  %v44_v44 = vld [vmem:[%s1464_s0 + $0x18] sm:$0xff] }
  0x1e   :  { %v509_v42 = vld [vmem:[%s1470_s6] sm:$0xff]  ;;  %v67_v46 = vld [vmem:[%s1465_s1 + $0x10] sm:$0xff]  ;;  %v66_v48 = vld [vmem:[%s1465_s1 + $0x8] sm:$0xff] }
  0x1f   :  { %946 = vmatpush3.xpose.msk.msra.mxu0 %vm81_vm0, %v73_v23  ;;  %554 = vperm.xlu0 %1070, %v516_v29   ;;  %v696_v45 = vld [vmem:[%s1472_s8] sm:$0x3]  ;;  %v43_v47 = vld [vmem:[%s1464_s0 + $0x10] sm:$0xff]  ;;  %v42_v49 = vld [vmem:[%s1464_s0 + $0x8] sm:$0xff]  ;;  %s793_s8 = sshll.u32 %s1099_s15, 4  ;;  %s794_s8 = int_to_ptr.vmem [resolvable:$true] %s793_s8 }
  0x20   :  { %990 = vmatpush3.xpose.msk.msra.mxu1 %vm259_vm1, %v49_v24  ;;  %947 = vmatprep.subr.msk.mxu0 %vm81_vm0, %v72_v27  ;;  %v65_v50 = vld [vmem:[%s1465_s1] sm:$0xff]  ;;  %v58_v52 = vld [vmem:[%s1467_s3 + $0x8] sm:$0xff]  ;;  %v59_v54 = vld [vmem:[%s1467_s3 + $0x10] sm:$0xff]  ;;  %p1079_p1 = scmp.lt.s32.totalorder %s794_s8, %s794_s8 }
  0x21   :  { %991 = vmatprep.subr.msk.mxu1 %vm259_vm1, %v48_v28  ;;  %549 = vperm.xlu1 %1071, %v515_v30   ;;  %v41_v51 = vld [vmem:[%s1464_s0] sm:$0xff]  ;;  %v34_v53 = vld [vmem:[%s1466_s2 + $0x8] sm:$0xff]  ;;  %v35_v55 = vld [vmem:[%s1466_s2 + $0x10] sm:$0xff] }
  0x22   :  { %v60_v56 = vld [vmem:[%s1467_s3 + $0x18] sm:$0xff]  ;;  %v61_v58 = vld [vmem:[%s1467_s3 + $0x20] sm:$0xff]  ;;  %v62_v60 = vld [vmem:[%s1467_s3 + $0x28] sm:$0xff] }
  0x23   :  { %948 = vmatpush3.xpose.msk.msra.mxu0 %vm81_vm0, %v72_v27  ;;  %544 = vperm.xlu0 %1070, %v514_v33   ;;  %v36_v57 = vld [vmem:[%s1466_s2 + $0x18] sm:$0xff]  ;;  %v37_v59 = vld [vmem:[%s1466_s2 + $0x20] sm:$0xff]  ;;  %v38_v61 = vld [vmem:[%s1466_s2 + $0x28] sm:$0xff] }
  0x24   :  { %992 = vmatpush3.xpose.msk.msra.mxu1 %vm259_vm1, %v48_v28  ;;  %949 = vmatprep.subr.msk.mxu0 %vm81_vm0, %v71_v31  ;;  %v63_v62 = vld [vmem:[%s1467_s3 + $0x30] sm:$0xff]  ;;  %v64_v0 = vld [vmem:[%s1467_s3 + $0x38] sm:$0xff]  ;;  %v501_v2 = vld [vmem:[%s1469_s5] sm:$0xff] }
  0x25   :  { %993 = vmatprep.subr.msk.mxu1 %vm259_vm1, %v47_v32  ;;  %539 = vperm.xlu1 %1071, %v513_v34   ;;  %v39_v63 = vld [vmem:[%s1466_s2 + $0x30] sm:$0xff]  ;;  %v40_v1 = vld [vmem:[%s1466_s2 + $0x38] sm:$0xff] }
  0x27   :  { %950 = vmatpush3.xpose.msk.msra.mxu0 %vm81_vm0, %v71_v31  ;;  %534 = vperm.xlu0 %1070, %v512_v37  }
  0x28   :  { %994 = vmatpush3.xpose.msk.msra.mxu1 %vm259_vm1, %v47_v32  ;;  %951 = vmatprep.subr.msk.mxu0 %vm81_vm0, %v70_v35 }
  0x29   :  { %995 = vmatprep.subr.msk.mxu1 %vm259_vm1, %v46_v36  ;;  %529 = vperm.xlu1 %1071, %v511_v38  }
  0x2b   :  { %952 = vmatpush3.xpose.msk.msra.mxu0 %vm81_vm0, %v70_v35  ;;  %524 = vperm.xlu0 %1070, %v510_v41  }
  0x2c   :  { %996 = vmatpush3.xpose.msk.msra.mxu1 %vm259_vm1, %v46_v36  ;;  %953 = vmatprep.subr.msk.mxu0 %vm81_vm0, %v69_v39 }
  0x2d   :  { %997 = vmatprep.subr.msk.mxu1 %vm259_vm1, %v45_v40  ;;  %519 = vperm.xlu1 %1071, %v509_v42  }
  0x2f   :  { %954 = vmatpush3.xpose.msk.msra.mxu0 %vm81_vm0, %v69_v39  ;;  %699 = vperm.xlu0 %1070, %v696_v45  }
  0x30   :  { %998 = vmatpush3.xpose.msk.msra.mxu1 %vm259_vm1, %v45_v40  ;;  %955 = vmatprep.subr.msk.mxu0 %vm81_vm0, %v68_v43 }
  0x31   :  { %999 = vmatprep.subr.msk.mxu1 %vm259_vm1, %v44_v44 }
  0x33   :  { %956 = vmatpush3.xpose.msk.msra.mxu0 %vm81_vm0, %v68_v43 }
  0x34   :  { %1000 = vmatpush3.xpose.msk.msra.mxu1 %vm259_vm1, %v44_v44  ;;  %957 = vmatprep.subr.msk.mxu0 %vm81_vm0, %v67_v46 }
  0x35   :  { %1001 = vmatprep.subr.msk.mxu1 %vm259_vm1, %v43_v47 }
  0x37   :  { %958 = vmatpush3.xpose.msk.msra.mxu0 %vm81_vm0, %v67_v46 }
  0x38   :  { %1002 = vmatpush3.xpose.msk.msra.mxu1 %vm259_vm1, %v43_v47  ;;  %959 = vmatprep.subr.msk.mxu0 %vm81_vm0, %v66_v48 }
  0x39   :  { %1003 = vmatprep.subr.msk.mxu1 %vm259_vm1, %v42_v49 }
  0x3b   :  { %960 = vmatpush3.xpose.msk.msra.mxu0 %vm81_vm0, %v66_v48 }
  0x3c   :  { %1004 = vmatpush3.xpose.msk.msra.mxu1 %vm259_vm1, %v42_v49  ;;  %961 = vmatprep.subr.msk.mxu0 %vm81_vm0, %v65_v50 }
  0x3d   :  { %1005 = vmatprep.subr.msk.mxu1 %vm259_vm1, %v41_v51 }
  0x3f   :  { %962 = vmatpush3.xpose.msk.msra.mxu0 %vm81_vm0, %v65_v50 }
  0x40   :  { %1006 = vmatpush3.xpose.msk.msra.mxu1 %vm259_vm1, %v41_v51  ;;  %v502_v51 = vld [vmem:[%s1469_s5 + $0x8] sm:$0xff] }
  0x42   :  { %964 = vmatmul.mubr.msk.f32.vlgmr.msra.gmra.mxu0 %vm81_vm0, %v58_v52  ;;  %v503_v52 = vld [vmem:[%s1469_s5 + $0x10] sm:$0xff] }
  0x43   :  { %1008 = vmatmul.mubr.msk.f32.vlgmr.msra.gmra.mxu1 %vm259_vm1, %v34_v53  ;;  %966 = vmatprep.mubr.msk.f32.mxu0 %vm81_vm0, %v59_v54  ;;  %v504_v53 = vld [vmem:[%s1469_s5 + $0x18] sm:$0xff]  ;;  %v505_v54 = vld [vmem:[%s1469_s5 + $0x20] sm:$0xff] }
  0x44   :  { %1010 = vmatprep.mubr.msk.f32.mxu1 %vm259_vm1, %v35_v55  ;;  %v506_v55 = vld [vmem:[%s1469_s5 + $0x28] sm:$0xff] }
  0x46   :  { %967 = vmatmul.mubr.msk.f32.gmra.mxu0 %vm81_vm0, %v60_v56  ;;  %v507_v56 = vld [vmem:[%s1469_s5 + $0x30] sm:$0xff] }
  0x47   :  { %1011 = vmatmul.mubr.msk.f32.gmra.mxu1 %vm259_vm1, %v36_v57  ;;  %969 = vmatprep.mubr.msk.f32.mxu0 %vm81_vm0, %v61_v58  ;;  %v508_v57 = vld [vmem:[%s1469_s5 + $0x38] sm:$0xff]  ;;  %v1097_v58 = vmov 0.0  }
  0x48   :  { %1013 = vmatprep.mubr.msk.f32.mxu1 %vm259_vm1, %v37_v59  ;;  %1047 = vmatprep.subr.mxu1 %v1097_v58 }
  0x4a   :  { %970 = vmatmul.mubr.msk.f32.gmra.mxu0 %vm81_vm0, %v62_v60 }
  0x4b   :  { %1014 = vmatmul.mubr.msk.f32.gmra.mxu1 %vm259_vm1, %v38_v61  ;;  %972 = vmatprep.mubr.msk.f32.mxu0 %vm81_vm0, %v63_v62 }
  0x4c   :  { %1016 = vmatprep.mubr.msk.f32.mxu1 %vm259_vm1, %v39_v63 }
  0x4e   :  { %973 = vmatmul.mubr.msk.f32.gmra.mxu0 %vm81_vm0, %v64_v0 }
  0x4f   :  { %1017 = vmatmul.mubr.msk.f32.gmra.mxu1 %vm259_vm1, %v40_v1  ;;  %1035 = vmatprep.mubr.msk.f32.mxu0 %vm557_vm2, %v501_v2 }
  0x50   :  { %1063 = vmatprep.mubr.msk.f32.mxu1 %vm1098_vm3, %v1097_v58 }
  0x81   :  { %v483_v9 = vpop.permute.xlu0 %482 }
  0x84   :  { %v473_v12 = vpop.permute.xlu1 %472 }
  0x85   :  { %v478_v17 = vpop.permute.xlu0 %477 }
  0x88   :  { %v468_v20 = vpop.permute.xlu1 %467 }
  0x92   :  { %v463_v32 = vpop.permute.xlu0 %462 }
  0x94   :  { %v458_v36 = vpop.permute.xlu1 %457 }
  0x96   :  { %v453_v43 = vpop.permute.xlu0 %452 }
  0x98   :  { %v448_v46 = vpop.permute.xlu1 %447 }
  0x9a   :  { %v555_v61 = vpop.permute.xlu0 %554 }
  0x9c   :  { %v550_v63 = vpop.permute.xlu1 %549 }
  0x9e   :  { %v545_v2 = vpop.permute.xlu0 %544 }
 0x102   :  { %v965_v3 = vpop.f32.mrf.mxu0 }
 0x103   :  { %v1009_v4 = vpop.f32.mrf.mxu1 }
 0x104   :  { %v220_v5 = vpop.f32.mrf.mxu0  ;;  %v404_v37 = vadd.f32 %v1009_v4, %v965_v3  ;;  %v540_v4 = vpop.permute.xlu1 %539 }
 0x105   :  { %v398_v6 = vpop.f32.mrf.mxu1 }
 0x106   :  { %v968_v7 = vpop.f32.mrf.mxu0  ;;  %v399_v40 = vadd.f32 %v398_v6, %v220_v5  ;;  %v486_v44 = vadd.f32 %v453_v43, %v404_v37 }
 0x107   :  { %v1012_v8 = vpop.f32.mrf.mxu1 }
 0x108   :  { %v230_v10 = vpop.f32.mrf.mxu0  ;;  %v414_v28 = vadd.f32 %v1012_v8, %v968_v7  ;;  %v485_v47 = vadd.f32 %v448_v46, %v399_v40  ;;  %v494_v49 = vmax.f32 %v486_v44, 0.0 }
 0x109   :  { %v408_v11 = vpop.f32.mrf.mxu1 }
 0x10a   :  { %v971_v13 = vpop.f32.mrf.mxu0  ;;  %v409_v33 = vadd.f32 %v408_v11, %v230_v10  ;;  %v488_v38 = vadd.f32 %v463_v32, %v414_v28  ;;  %v493_v50 = vmax.f32 %v485_v47, 0.0  ;;  %v535_v11 = vpop.permute.xlu0 %534 }
 0x10b   :  { %v1015_v14 = vpop.f32.mrf.mxu1 }
 0x10c   :  { %v240_v15 = vpop.f32.mrf.mxu0  ;;  %v424_v21 = vadd.f32 %v1015_v14, %v971_v13  ;;  %v487_v41 = vadd.f32 %v458_v36, %v409_v33  ;;  %v496_v45 = vmax.f32 %v488_v38, 0.0  ;;  %v530_v14 = vpop.permute.xlu1 %529  ;;  %v782_v33 = vlaneseq }
 0x10d   :  { %v418_v16 = vpop.f32.mrf.mxu1 }
 0x10e   :  { %v974_v18 = vpop.f32.mrf.mxu0  ;;  %v419_v25 = vadd.f32 %v418_v16, %v240_v15  ;;  %v490_v29 = vadd.f32 %v473_v12, %v424_v21  ;;  %v495_v48 = vmax.f32 %v487_v41, 0.0 }
 0x10f   :  { %v1018_v19 = vpop.f32.mrf.mxu1 }
 0x110   :  { %v434_v22 = vadd.f32 %v1018_v19, %v974_v18  ;;  %v250_v23 = vpop.f32.mrf.mxu0  ;;  %v489_v34 = vadd.f32 %v468_v20, %v419_v25  ;;  %v498_v39 = vmax.f32 %v490_v29, 0.0  ;;  %v525_v19 = vpop.permute.xlu0 %524 }
 0x111   :  { %v428_v24 = vpop.f32.mrf.mxu1 }
 0x112   :  { %v492_v26 = vadd.f32 %v483_v9, %v434_v22  ;;  %v429_v27 = vadd.f32 %v428_v24, %v250_v23  ;;  %v497_v42 = vmax.f32 %v489_v34, 0.0  ;;  %v520_v22 = vpop.permute.xlu1 %519 }
 0x114   :  { %v500_v30 = vmax.f32 %v492_v26, 0.0  ;;  %v491_v31 = vadd.f32 %v478_v17, %v429_v27  ;;  %v695_v27 = vld [vmem:[%s1471_s7] sm:$0x3]  ;;  %v700_v28 = vpop.permute.xlu0 %699  ;;  %s1074_s7 = scalar_lea.vmem %s794_s8, 32 }
 0x115   :  { %p1075_p0 = scmp.ne.s32.totalorder %s794_s8, %s1074_s7  ;;  %p1080_p2 = scmp.lt.s32.totalorder %s1074_s7, %s1074_s7 }
 0x116   :  { %v499_v35 = vmax.f32 %v491_v31, 0.0  ;;  %1019 = vmatprep.subr.mxu0 %v500_v30 }
 0x117   :  { %1020 = vmatpush3.msra.mxu0 %v500_v30  ;;  %p1081_p3 = por %p1080_p2, %p1079_p1 }
 0x118   :  { %1021 = vmatprep.subr.mxu0 %v499_v35 }
 0x119   :  { %1022 = vmatpush3.msra.mxu0 %v499_v35  ;;  %v783_v35 = vshrl.u32 %v782_v33, 7  ;;  %p1082_p4 = pnand %p1081_p3, %p1075_p0 }
 0x11a   :  { %1023 = vmatprep.subr.mxu0 %v498_v39 }
 0x11b   :  { %1024 = vmatpush3.msra.mxu0 %v498_v39  ;;  %vm784_vm4 = vcmp.eq.s32.totalorder %v783_v35, 0 }
 0x11c   :  { %1025 = vmatprep.subr.mxu0 %v497_v42 }
 0x11d   :  { %1026 = vmatpush3.msra.mxu0 %v497_v42 }
 0x11e   :  { %1027 = vmatprep.subr.mxu0 %v496_v45 }
 0x11f   :  { %1028 = vmatpush3.msra.mxu0 %v496_v45 }
 0x120   :  { %1029 = vmatprep.subr.mxu0 %v495_v48 }
 0x121   :  { %1030 = vmatpush3.msra.mxu0 %v495_v48 }
 0x122   :  { %1031 = vmatprep.subr.mxu0 %v494_v49 }
 0x123   :  { %1032 = vmatpush3.msra.mxu0 %v494_v49 }
 0x124   :  { %1033 = vmatprep.subr.mxu0 %v493_v50 }
 0x125   :  { %1034 = vmatpush3.msra.mxu0 %v493_v50 }
 0x126   :  { %1036 = vmatmul.mubr.msk.f32.vlgmr.msra.gmra.mxu0 %vm557_vm2, %v502_v51 }
 0x127   :  { %1038 = vmatprep.mubr.msk.f32.mxu0 %vm557_vm2, %v503_v52 }
 0x12a   :  { %1039 = vmatmul.mubr.msk.f32.gmra.mxu0 %vm557_vm2, %v504_v53 }
 0x12b   :  { %1041 = vmatprep.mubr.msk.f32.mxu0 %vm557_vm2, %v505_v54 }
 0x12e   :  { %1042 = vmatmul.mubr.msk.f32.gmra.mxu0 %vm557_vm2, %v506_v55 }
 0x12f   :  { %1044 = vmatprep.mubr.msk.f32.mxu0 %vm557_vm2, %v507_v56 }
 0x132   :  { %1045 = vmatmul.mubr.msk.f32.gmra.mxu0 %vm557_vm2, %v508_v57 }
 0x1e6   :  { %v1037_v59 = vpop.f32.mrf.mxu0 }
 0x1e7   :  { %v654_v20 = vadd.f32 %v1037_v59, %v525_v19 }
 0x1e8   :  { %v648_v60 = vpop.f32.mrf.mxu0 }
 0x1e9   :  { %v649_v23 = vadd.f32 %v648_v60, %v520_v22  ;;  %v688_v25 = vmax.f32 %v654_v20, 0.0 }
 0x1ea   :  { %v1040_v62 = vpop.f32.mrf.mxu0 }
 0x1eb   :  { %v664_v15 = vadd.f32 %v1040_v62, %v535_v11  ;;  %v687_v26 = vmax.f32 %v649_v23, 0.0 }
 0x1ec   :  { %v658_v0 = vpop.f32.mrf.mxu0 }
 0x1ed   :  { %v659_v17 = vadd.f32 %v658_v0, %v530_v14  ;;  %v690_v21 = vmax.f32 %v664_v15, 0.0 }
 0x1ee   :  { %v1043_v1 = vpop.f32.mrf.mxu0 }
 0x1ef   :  { %v674_v8 = vadd.f32 %v1043_v1, %v545_v2  ;;  %v689_v24 = vmax.f32 %v659_v17, 0.0 }
 0x1f0   :  { %v668_v3 = vpop.f32.mrf.mxu0 }
 0x1f1   :  { %v669_v12 = vadd.f32 %v668_v3, %v540_v4  ;;  %v692_v16 = vmax.f32 %v674_v8, 0.0 }
 0x1f2   :  { %v1046_v5 = vpop.f32.mrf.mxu0 }
 0x1f3   :  { %v684_v6 = vadd.f32 %v1046_v5, %v555_v61  ;;  %v691_v18 = vmax.f32 %v669_v12, 0.0 }
 0x1f4   :  { %v678_v7 = vpop.f32.mrf.mxu0 }
 0x1f5   :  { %v694_v9 = vmax.f32 %v684_v6, 0.0  ;;  %v679_v10 = vadd.f32 %v678_v7, %v550_v63 }
 0x1f7   :  { %v693_v13 = vmax.f32 %v679_v10, 0.0  ;;  %1048 = vmatpush3.msra.mxu1 %v694_v9 }
 0x1f8   :  { %1049 = vmatprep.subr.mxu1 %v1097_v58 }
 0x1f9   :  { %1050 = vmatpush3.msra.mxu1 %v693_v13 }
 0x1fa   :  { %1051 = vmatprep.subr.mxu1 %v1097_v58 }
 0x1fb   :  { %1052 = vmatpush3.msra.mxu1 %v692_v16 }
 0x1fc   :  { %1053 = vmatprep.subr.mxu1 %v1097_v58 }
 0x1fd   :  { %1054 = vmatpush3.msra.mxu1 %v691_v18 }
 0x1fe   :  { %1055 = vmatprep.subr.mxu1 %v1097_v58 }
 0x1ff   :  { %1056 = vmatpush3.msra.mxu1 %v690_v21 }
 0x200   :  { %1057 = vmatprep.subr.mxu1 %v1097_v58 }
 0x201   :  { %1058 = vmatpush3.msra.mxu1 %v689_v24 }
 0x202   :  { %1059 = vmatprep.subr.mxu1 %v1097_v58 }
 0x203   :  { %1060 = vmatpush3.msra.mxu1 %v688_v25 }
 0x204   :  { %1061 = vmatprep.subr.mxu1 %v1097_v58 }
 0x205   :  { %1062 = vmatpush3.msra.mxu1 %v687_v26 }
 0x206   :  { %1064 = vmatmul.mubr.msk.f32.vlgmr.msra.gmra.mxu1 %vm557_vm2, %v695_v27 }
 0x2c6   :  { %v771_v29 = vpop.f32.mrf.mxu1 }
 0x2c7   :  { %v772_v30 = vadd.f32 %v771_v29, %v700_v28 }
 0x2c8   :  { %v1065_v31 = vpop.f32.mrf.mxu1 }
 0x2c9   :  { %v775_v32 = vmul.f32 0.05, %v772_v30 }
 0x2cb   :  { %1072 = vtanh.f32 %v775_v32 }
 0x2d8   :  { %v1073_v34 = vpop.eup %1072 }
 0x2d9   :  { %v777_v36 = vmul.f32 2.0, %v1073_v34  ;;  %v779_v37 = vmul.f32 20.0, %v1073_v34 }
 0x2db   :  { %v778_v38 = vmax.f32 %v777_v36, 0.0  ;;  %v780_v39 = vmin.f32 %v779_v37, 0.0 }
 0x2dd   :  { %v781_v40 = vadd.f32 %v780_v39, %v778_v38 }
 0x2df   :  { %v785_v41 = vsel %vm784_vm4, %v772_v30, %v781_v40 }
 0x2e0   :  { %786 = vst [vmem:[#allocation2] sm:$0x3] %v785_v41 }
 0x2e1   :  { %1085 = shalt.err (!%p1082_p4)
}
 0x2e2   :  { %796 = dma.vmem_to_hbm [thread:$0]  %s794_s8, 32, %s1473_s9, [#allocation3]  }
 0x2e3   :  { %1094 = dma.done.wait [#allocation3], 32  }
 0x2e4   :  { %1095 = vsyncadd [#allocation3], 4294967264 }
 0x2e5   :  { %800 = vsyncpa [#allocation3], 1 }

</bundles_post_ra>
